<compile_context>
chip_gen: v6e
topology: v6e:2x2x1
jax: 0.10.0
libtpu: 0.0.40
codegen_flags: <defaults>
</compile_context>

<pallas_src>
import math

import jax
import jax.numpy as jnp
from jax.experimental import pallas as pl
from jax.experimental.pallas import tpu as pltpu

_LANE = 128
_SUBLANE = 8
# Tile-VMEM budget (double-buffered inputs/outputs + accumulator).  Kept well
# under the v7x 32 MiB scoped default so one config works on v5e/v6e/v7x.
_VMEM_TILE_BUDGET = 20 * 1024 * 1024
# Scoped-VMEM limit: > v5e's 16 MiB default, < v7x's 64 MiB physical.
_VMEM_LIMIT_BYTES = 40 * 1024 * 1024


def _round_up(x, m):
    return ((x + m - 1) // m) * m


def _cdiv(a, b):
    return -(-a // b)


def _choose_tile(dim_aligned, align, max_tile):
    """Pick a tile for an already (8,128)-aligned dimension.

    Prefers the largest tile (multiple of `align`, <= max_tile) that divides
    `dim_aligned` exactly (zero padding).  If no reasonable divisor exists,
    falls back to the smallest aligned tile that covers the dim in the minimum
    number of blocks (minimal padding)."""
    max_tile = max(align, (max_tile // align) * align)
    if dim_aligned <= max_tile:
        return dim_aligned                       # single full-extent block
    lo = max(align, (max_tile // 4 // align) * align)
    for t in range(max_tile, lo - 1, -align):
        if dim_aligned % t == 0:
            return t
    nblocks = _cdiv(dim_aligned, max_tile)
    return _round_up(_cdiv(dim_aligned, nblocks), align)


def _make_kernel(has_bias, has_k_axis, mxu_dtype):
    """Build the kernel body for the (bias, K-axis, MXU-dtype) variant."""

    def kernel(*refs):
        if has_k_axis:
            acc_ref = refs[-1]
            refs = refs[:-1]
        if has_bias:
            x_ref, w_ref, b_ref, o_ref = refs
        else:
            x_ref, w_ref, o_ref = refs
            b_ref = None

        w = w_ref[...]
        w_sq = w * w                      # square at input precision (f32)
        x = x_ref[...]
        if mxu_dtype is not None:
            w_sq = w_sq.astype(mxu_dtype)
            x = x.astype(mxu_dtype)
        # Contract x's K (axis 1) against w_sq's K (axis 1): feeds the MXU
        # with no explicit transpose of the squared-weight tile.
        part = jax.lax.dot_general(
            x, w_sq,
            dimension_numbers=(((1,), (1,)), ((), ())),
            preferred_element_type=jnp.float32)

        if not has_k_axis:
            if b_ref is not None:
                part = part + b_ref[...]
            o_ref[...] = part.astype(o_ref.dtype)
            return

        k = pl.program_id(2)

        @pl.when(k == 0)
        def _():
            acc_ref[...] = part           # first-dot init: no zero-fill pass

        @pl.when(k > 0)
        def _():
            acc_ref[...] += part

        @pl.when(k == pl.num_programs(2) - 1)
        def _():
            acc = acc_ref[...]
            if b_ref is not None:
                acc = acc + b_ref[...]
            o_ref[...] = acc.astype(o_ref.dtype)

    return kernel


def linearsq(x, weight, bias=None, *, tm_max=512, tn_max=512, tk_max=1024,
             mxu_dtype=None, vmem_tile_budget=_VMEM_TILE_BUDGET):
    """y = x @ (weight**2).T + bias  (PyTorch LinearSQ forward)."""
    orig_shape = x.shape
    if x.ndim != 2:
        x = x.reshape(-1, orig_shape[-1])
    M, K = x.shape
    N, K2 = weight.shape
    assert K == K2, "in_features mismatch"
    has_bias = bias is not None
    out_dtype = x.dtype
    in_bytes = jnp.dtype(x.dtype).itemsize
    w_bytes = jnp.dtype(weight.dtype).itemsize
    out_bytes = jnp.dtype(out_dtype).itemsize

    # 1) Hardware alignment first (sublane=8, lane=128) ...
    Mp = _round_up(M, _SUBLANE)
    Np = _round_up(N, _LANE)
    Kp = _round_up(K, _LANE)

    # 2) ... then tiles that divide the aligned dims (zero / minimal padding).
    tm = _choose_tile(Mp, _SUBLANE, tm_max)
    tn = _choose_tile(Np, _LANE, tn_max)

    # 3) v7x megacore: if the whole output is a single tile, split N into >=2
    #    lane-aligned blocks so the "parallel" axes feed both TensorCores.
    if _cdiv(Mp, tm) == 1 and _cdiv(Np, tn) == 1 and Np >= 2 * _LANE:
        for t in range(((tn // 2) // _LANE) * _LANE, _LANE - 1, -_LANE):
            if Np % t == 0:
                tn = t
                break

    # 4) K: keep it fully resident (no reduction axis, no accumulator) when
    #    the double-buffered tiles fit the VMEM budget; otherwise tile K.
    def vmem_bytes(tk, k_axis):
        b = 2 * tm * tk * in_bytes + 2 * tn * tk * w_bytes
        b += 2 * tm * tn * out_bytes
        if k_axis:
            b += tm * tn * 4
        if has_bias:
            b += 2 * tn * 4
        return b

    if vmem_bytes(Kp, False) <= vmem_tile_budget:
        tk, has_k_axis = Kp, False
    else:
        has_k_axis = True
        cap = tk_max
        tk = _choose_tile(Kp, _LANE, cap)
        while vmem_bytes(tk, True) > vmem_tile_budget and cap > _LANE:
            cap //= 2
            tk = _choose_tile(Kp, _LANE, cap)

    # 5) Pad only what the chosen tiles require (usually nothing).
    Mt = _round_up(Mp, tm)
    Nt = _round_up(Np, tn)
    Kt = _round_up(Kp, tk)
    xp = x if (Mt == M and Kt == K) else jnp.pad(x, ((0, Mt - M), (0, Kt - K)))
    wp = weight if (Nt == N and Kt == K) else jnp.pad(
        weight, ((0, Nt - N), (0, Kt - K)))

    grid = (Mt // tm, Nt // tn) + ((Kt // tk,) if has_k_axis else ())

    if has_k_axis:
        x_map = lambda i, j, k: (i, k)
        w_map = lambda i, j, k: (j, k)
        b_map = lambda i, j, k: (0, j)
        o_map = lambda i, j, k: (i, j)
        semantics = ("parallel", "parallel", "arbitrary")
        scratch = [pltpu.VMEM((tm, tn), jnp.float32)]
    else:
        x_map = lambda i, j: (i, 0)
        w_map = lambda i, j: (j, 0)
        b_map = lambda i, j: (0, j)
        o_map = lambda i, j: (i, j)
        semantics = ("parallel", "parallel")
        scratch = []

    in_specs = [pl.BlockSpec((tm, tk), x_map),
                pl.BlockSpec((tn, tk), w_map)]
    args = [xp, wp]
    if has_bias:
        b2d = bias.astype(jnp.float32).reshape(1, N)
        if Nt != N:
            b2d = jnp.pad(b2d, ((0, 0), (0, Nt - N)))
        in_specs.append(pl.BlockSpec((1, tn), b_map))
        args.append(b2d)

    flops = 2 * M * N * K + N * K                  # matmul + weight squaring
    bytes_accessed = (M * K * in_bytes + N * K * w_bytes + M * N * out_bytes
                      + (N * 4 if has_bias else 0))

    out = pl.pallas_call(
        _make_kernel(has_bias, has_k_axis, mxu_dtype),
        out_shape=jax.ShapeDtypeStruct((Mt, Nt), out_dtype),
        grid_spec=pltpu.PrefetchScalarGridSpec(
            num_scalar_prefetch=0,
            grid=grid,
            in_specs=in_specs,
            out_specs=pl.BlockSpec((tm, tn), o_map),
            scratch_shapes=scratch,
        ),
        compiler_params=pltpu.CompilerParams(
            dimension_semantics=semantics,
            vmem_limit_bytes=_VMEM_LIMIT_BYTES),
        cost_estimate=pl.CostEstimate(
            flops=flops, transcendentals=0, bytes_accessed=bytes_accessed),
    )(*args)

    if Mt != M or Nt != N:
        out = out[:M, :N]
    if len(orig_shape) != 2:
        out = out.reshape(orig_shape[:-1] + (N,))
    return out


def init_linearsq_params(key, in_features, out_features):
    """Deterministic init matching the PyTorch module's shapes/ranges."""
    kw, kb = jax.random.split(key)
    # kaiming_uniform_(a=sqrt(5)) on (out, in) -> bound = 1/sqrt(fan_in)
    bound = 1.0 / math.sqrt(in_features)
    weight = jax.random.uniform(kw, (out_features, in_features),
                                minval=-bound, maxval=bound, dtype=jnp.float32)
    bias = jax.random.uniform(kb, (out_features,),
                              minval=-bound, maxval=bound, dtype=jnp.float32)
    return weight, bias


if __name__ == "__main__":
    key = jax.random.PRNGKey(0)
    k_x, k_p, k_x2, k_p2 = jax.random.split(key, 4)

    # Small shapes consistent with the module (batch=8, in=32, out=16).
    batch, in_features, out_features = 8, 32, 16
    x = jax.random.normal(k_x, (batch, in_features), dtype=jnp.float32)
    weight, bias = init_linearsq_params(k_p, in_features, out_features)

    y = linearsq(x, weight, bias)
    jax.block_until_ready(y)
    y_ref = x @ (weight ** 2).T + bias
    assert y.shape == (batch, out_features)
    assert jnp.allclose(y, y_ref, atol=1e-5, rtol=1e-5)

    # No-bias variant (bias-free kernel compile path).
    y_nb = linearsq(x, weight, None)
    jax.block_until_ready(y_nb)
    assert jnp.allclose(y_nb, x @ (weight ** 2).T, atol=1e-5, rtol=1e-5)

    # Larger, non-pow2 shapes: with alignment-first tiling this now runs with
    # ZERO padding, K fully resident (no accumulator), and a (1, 3) grid so
    # both v7x TensorCores get work.
    M2, K2, N2 = 384, 640, 384
    x2 = jax.random.normal(k_x2, (M2, K2), dtype=jnp.float32)
    w2, b2 = init_linearsq_params(k_p2, K2, N2)
    y2 = linearsq(x2, w2, b2)
    jax.block_until_ready(y2)
    y2_ref = x2 @ (w2 ** 2).T + b2
    assert y2.shape == (M2, N2)
    assert jnp.allclose(y2, y2_ref, atol=5e-3, rtol=5e-3)

    # Force the K-tiled accumulator path (tiny VMEM budget) to exercise the
    # pl.when(k==0)/k==last logic on real hardware.
    y2k = linearsq(x2, w2, b2, tk_max=128, vmem_tile_budget=1)
    jax.block_until_ready(y2k)
    assert jnp.allclose(y2k, y2_ref, atol=5e-3, rtol=5e-3)

    print("KERNEL_OK")
</pallas_src>

<mosaic_0001>
module attributes {stable_mosaic.version = 11 : i64} {
  func.func @kernel(%arg0: i32, %arg1: i32, %arg2: memref<8x128xf32, #tpu.memory_space<vmem>>, %arg3: memref<128x128xf32, #tpu.memory_space<vmem>>, %arg4: memref<1x128xf32, #tpu.memory_space<vmem>>, %arg5: memref<8x128xf32, #tpu.memory_space<vmem>>) attributes {dimension_semantics = [#tpu.dimension_semantics<parallel>, #tpu.dimension_semantics<parallel>], iteration_bounds = array<i64: 1, 1>, scalar_prefetch = 0 : i64, scratch_operands = 0 : i64, tpu.core_type = #tpu.core_type<tc>, window_params = [{transform_indices = @transform_0, window_bounds = array<i64: 8, 128>}, {transform_indices = @transform_1, window_bounds = array<i64: 128, 128>}, {transform_indices = @transform_2, window_bounds = array<i64: 1, 128>}, {transform_indices = @transform_3, window_bounds = array<i64: 8, 128>}]} {
    %c0 = arith.constant 0 : index
    %c0_0 = arith.constant 0 : index
    %0 = vector.load %arg3[%c0, %c0_0] : memref<128x128xf32, #tpu.memory_space<vmem>>, vector<128x128xf32>
    %1 = arith.mulf %0, %0 : vector<128x128xf32>
    %c0_1 = arith.constant 0 : index
    %c0_2 = arith.constant 0 : index
    %2 = vector.load %arg2[%c0_1, %c0_2] : memref<8x128xf32, #tpu.memory_space<vmem>>, vector<8x128xf32>
    %cst = arith.constant dense<0.000000e+00> : vector<8x128xf32>
    %3 = tpu.matmul %2, %1, %cst {dimension_numbers = #tpu.dot_dimension_numbers<[1], [1], [0], [0], [0, 0, 1, 0], [], []>} : vector<8x128xf32>, vector<128x128xf32>, vector<8x128xf32> -> vector<8x128xf32>
    %c0_3 = arith.constant 0 : index
    %c0_4 = arith.constant 0 : index
    %4 = vector.load %arg4[%c0_3, %c0_4] : memref<1x128xf32, #tpu.memory_space<vmem>>, vector<1x128xf32>
    %5 = vector.broadcast %4 : vector<1x128xf32> to vector<8x128xf32>
    %6 = arith.addf %3, %5 : vector<8x128xf32>
    %c0_5 = arith.constant 0 : index
    %c0_6 = arith.constant 0 : index
    %7 = vector.load %arg5[%c0_5, %c0_6] : memref<8x128xf32, #tpu.memory_space<vmem>>, vector<8x128xf32>
    tpu.vector_store %arg5[%c0_5, %c0_6], %6 {strides = array<i32>} : memref<8x128xf32, #tpu.memory_space<vmem>>, vector<8x128xf32>,
    return
  }
  func.func @transform_0(%arg0: i32, %arg1: i32) -> (i32, i32) {
    %c0_i32 = arith.constant 0 : i32
    %c0_i32_0 = arith.constant 0 : i32
    return %arg0, %c0_i32 : i32, i32
  }
  func.func @transform_1(%arg0: i32, %arg1: i32) -> (i32, i32) {
    %c0_i32 = arith.constant 0 : i32
    %c0_i32_0 = arith.constant 0 : i32
    return %arg1, %c0_i32 : i32, i32
  }
  func.func @transform_2(%arg0: i32, %arg1: i32) -> (i32, i32) {
    %c0_i32 = arith.constant 0 : i32
    %c0_i32_0 = arith.constant 0 : i32
    return %c0_i32, %arg1 : i32, i32
  }
  func.func @transform_3(%arg0: i32, %arg1: i32) -> (i32, i32) {
    %c0_i32 = arith.constant 0 : i32
    return %arg0, %arg1 : i32, i32
  }
}

</mosaic_0001>

<bundles_post_ra>
// kernel: tpu_custom_call.1
= control target key start
LH: loop header
LB: loop body
LE: loop exit
PB: predicated region body
PF: predicated region fallthrough
CT: control target
= control target key end

     0   :  { %8 = vsyncpa [#allocation3], 0  ;;  %s350_s0 = inlined_call_operand.hbm [shape: f32[8,128], index: 0, kind: input, shape index: {}]   ;;  %s351_s1 = inlined_call_operand.hbm [shape: f32[128,128], index: 1, kind: input, shape index: {}]   ;;  %s352_s2 = inlined_call_operand.vmem [shape: f32[1,128], index: 2, kind: input, shape index: {}]   ;;  %s353_s3 = inlined_call_operand.hbm [shape: f32[8,128], index: 3, kind: output, shape index: {}]  }
   0x1   :  { %9 = vsyncpa [#allocation6], 0 }
   0x2   :  { %10 = vsyncpa [#allocation4], 0  ;;  %s294_s12 = smov [#allocation2]   ;;  %s295_s14 = smov [#allocation5]  }
   0x3   :  { %s17_s13 = sshll.u32 %s294_s12, 4  ;;  %s26_s15 = sshll.u32 %s295_s14, 4  ;;  %s18_s13 = int_to_ptr.vmem [resolvable:$true] %s17_s13  ;;  %s27_s15 = int_to_ptr.vmem [resolvable:$true] %s26_s15 }
   0x4   :  { %s236_s16 = scalar_lea.vmem %s18_s13, 128  ;;  %p241_p1 = scmp.lt.s32.totalorder %s18_s13, %s18_s13 }
   0x5   :  { %p237_p0 = scmp.ne.s32.totalorder %s18_s13, %s236_s16  ;;  %p242_p2 = scmp.lt.s32.totalorder %s236_s16, %s236_s16 }
   0x7   :  { %p243_p3 = por %p242_p2, %p241_p1 }
   0x9   :  { %p244_p4 = pnand %p243_p3, %p237_p0 }
   0xb   :  { %247 = shalt.err (!%p244_p4)
}
   0xc   :  { %20 = dma.hbm_to_vmem [thread:$0]  %s350_s0, 128, %s18_s13, [#allocation3]  }
   0xd   :  { %s256_s19 = scalar_lea.vmem %s27_s15, 2048  ;;  %p261_p6 = scmp.lt.s32.totalorder %s27_s15, %s27_s15 }
   0xe   :  { %p257_p5 = scmp.ne.s32.totalorder %s27_s15, %s256_s19  ;;  %p262_p7 = scmp.lt.s32.totalorder %s256_s19, %s256_s19 }
  0x10   :  { %p263_p8 = por %p262_p7, %p261_p6 }
  0x12   :  { %p264_p9 = pnand %p263_p8, %p257_p5 }
  0x14   :  { %267 = shalt.err (!%p264_p9)
}
  0x15   :  { %s296_s20 = smov 128   ;;  %s297_s21 = smov 8  }
  0x16   :  { %32 = dma.hbm_to_vmem [thread:$0]  %s351_s1, 2048, %s27_s15, [#allocation6], %s296_s20, %s296_s20, %s297_s21  }
  0x17   :  { %288 = dma.done.wait [#allocation3], 128  }
  0x18   :  { %289 = vsyncadd [#allocation3], 4294967168 }
  0x19   :  { %290 = dma.done.wait [#allocation6], 2048  }
  0x1a   :  { %291 = vsyncadd [#allocation6], 4294965248  ;;  %v298_v0 = vmov 0.0   ;;  %vm299_vm0 = vmmov 0   ;;  %v56_v1 = vld [vmem:[#allocation5 + $0x78] sm:$0xff]  ;;  %v55_v2 = vld [vmem:[#allocation5 + $0x70] sm:$0xff] }
  0x1b   :  { %186 = vmatprep.subr.mxu0 %v298_v0  ;;  %218 = vmatprep.mubr.msk.f32.mxu0 %vm299_vm0, %v298_v0  ;;  %v72_v3 = vmul.f32 %v56_v1, %v56_v1  ;;  %v71_v4 = vmul.f32 %v55_v2, %v55_v2  ;;  %v54_v5 = vld [vmem:[#allocation5 + $0x68] sm:$0xff]  ;;  %v53_v7 = vld [vmem:[#allocation5 + $0x60] sm:$0xff]  ;;  %v52_v9 = vld [vmem:[#allocation5 + $0x58] sm:$0xff]  ;;  %s300_s24 = smov [#allocation7]  }
  0x1c   :  { %v70_v6 = vmul.f32 %v54_v5, %v54_v5  ;;  %v69_v8 = vmul.f32 %v53_v7, %v53_v7  ;;  %v68_v10 = vmul.f32 %v52_v9, %v52_v9  ;;  %v51_v11 = vld [vmem:[#allocation5 + $0x50] sm:$0xff]  ;;  %v50_v13 = vld [vmem:[#allocation5 + $0x48] sm:$0xff]  ;;  %v49_v15 = vld [vmem:[#allocation5 + $0x40] sm:$0xff]  ;;  %s158_s25 = sshll.u32 %s300_s24, 4  ;;  %s159_s25 = int_to_ptr.vmem [resolvable:$true] %s158_s25 }
  0x1d   :  { %187 = vmatpush3.xpose.msra.mxu0 %v72_v3  ;;  %v67_v12 = vmul.f32 %v51_v11, %v51_v11  ;;  %v66_v14 = vmul.f32 %v50_v13, %v50_v13  ;;  %v65_v16 = vmul.f32 %v49_v15, %v49_v15  ;;  %v48_v17 = vld [vmem:[#allocation5 + $0x38] sm:$0xff]  ;;  %v47_v19 = vld [vmem:[#allocation5 + $0x30] sm:$0xff]  ;;  %v46_v21 = vld [vmem:[#allocation5 + $0x28] sm:$0xff]  ;;  %s268_s26 = scalar_lea.vmem %s159_s25, 128  ;;  %p273_p11 = scmp.lt.s32.totalorder %s159_s25, %s159_s25 }
  0x1e   :  { %188 = vmatprep.subr.mxu0 %v298_v0  ;;  %v64_v18 = vmul.f32 %v48_v17, %v48_v17  ;;  %v63_v20 = vmul.f32 %v47_v19, %v47_v19  ;;  %v62_v22 = vmul.f32 %v46_v21, %v46_v21  ;;  %v45_v23 = vld [vmem:[#allocation5 + $0x20] sm:$0xff]  ;;  %v44_v25 = vld [vmem:[#allocation5 + $0x18] sm:$0xff]  ;;  %v43_v27 = vld [vmem:[#allocation5 + $0x10] sm:$0xff]  ;;  %p269_p10 = scmp.ne.s32.totalorder %s159_s25, %s268_s26  ;;  %p274_p12 = scmp.lt.s32.totalorder %s268_s26, %s268_s26 }
  0x1f   :  { %v61_v24 = vmul.f32 %v45_v23, %v45_v23  ;;  %v60_v26 = vmul.f32 %v44_v25, %v44_v25  ;;  %v59_v28 = vmul.f32 %v43_v27, %v43_v27  ;;  %v42_v29 = vld [vmem:[#allocation5 + $0x8] sm:$0xff]  ;;  %v41_v31 = vld [vmem:[#allocation5] sm:$0xff]  ;;  %v73_v33 = vld [vmem:[#allocation2] sm:$0xff] }
  0x20   :  { %v58_v30 = vmul.f32 %v42_v29, %v42_v29  ;;  %v57_v32 = vmul.f32 %v41_v31, %v41_v31  ;;  %v168_v34 = vld [vmem:[%s352_s2] ss:$0 sm:$0xff]  ;;  %p275_p13 = por %p274_p12, %p273_p11 }
  0x21   :  { %189 = vmatpush3.xpose.msra.mxu0 %v71_v4 }
  0x22   :  { %190 = vmatprep.subr.mxu0 %v298_v0  ;;  %p276_p0 = pnand %p275_p13, %p269_p10 }
  0x25   :  { %191 = vmatpush3.xpose.msra.mxu0 %v70_v6 }
  0x26   :  { %192 = vmatprep.subr.mxu0 %v298_v0 }
  0x29   :  { %193 = vmatpush3.xpose.msra.mxu0 %v69_v8 }
  0x2a   :  { %194 = vmatprep.subr.mxu0 %v298_v0 }
  0x2d   :  { %195 = vmatpush3.xpose.msra.mxu0 %v68_v10 }
  0x2e   :  { %196 = vmatprep.subr.mxu0 %v298_v0 }
  0x31   :  { %197 = vmatpush3.xpose.msra.mxu0 %v67_v12 }
  0x32   :  { %198 = vmatprep.subr.mxu0 %v298_v0 }
  0x35   :  { %199 = vmatpush3.xpose.msra.mxu0 %v66_v14 }
  0x36   :  { %200 = vmatprep.subr.mxu0 %v298_v0 }
  0x39   :  { %201 = vmatpush3.xpose.msra.mxu0 %v65_v16 }
  0x3a   :  { %202 = vmatprep.subr.mxu0 %v298_v0 }
  0x3d   :  { %203 = vmatpush3.xpose.msra.mxu0 %v64_v18 }
  0x3e   :  { %204 = vmatprep.subr.mxu0 %v298_v0 }
  0x41   :  { %205 = vmatpush3.xpose.msra.mxu0 %v63_v20 }
  0x42   :  { %206 = vmatprep.subr.mxu0 %v298_v0 }
  0x45   :  { %207 = vmatpush3.xpose.msra.mxu0 %v62_v22 }
  0x46   :  { %208 = vmatprep.subr.mxu0 %v298_v0 }
  0x49   :  { %209 = vmatpush3.xpose.msra.mxu0 %v61_v24 }
  0x4a   :  { %210 = vmatprep.subr.mxu0 %v298_v0 }
  0x4d   :  { %211 = vmatpush3.xpose.msra.mxu0 %v60_v26 }
  0x4e   :  { %212 = vmatprep.subr.mxu0 %v298_v0 }
  0x51   :  { %213 = vmatpush3.xpose.msra.mxu0 %v59_v28 }
  0x52   :  { %214 = vmatprep.subr.mxu0 %v298_v0 }
  0x55   :  { %215 = vmatpush3.xpose.msra.mxu0 %v58_v30 }
  0x56   :  { %216 = vmatprep.subr.mxu0 %v298_v0 }
  0x59   :  { %217 = vmatpush3.xpose.msra.mxu0 %v57_v32 }
  0x5c   :  { %219 = vmatmul.mubr.f32.vlgmr.msra.gmra.mxu0 %v73_v33 }
 0x11c   :  { %v147_v35 = vpop.f32.mrf.mxu0 }
 0x11d   :  { %v148_v36 = vadd.f32 %v168_v34, %v147_v35 }
 0x11e   :  { %v220_v37 = vpop.f32.mrf.mxu0 }
 0x11f   :  { %151 = vst [vmem:[#allocation7] sm:$0xff] %v148_v36 }
 0x120   :  { %279 = shalt.err (!%p276_p0)
}
 0x121   :  { %161 = dma.vmem_to_hbm [thread:$0]  %s159_s25, 128, %s353_s3, [#allocation4]  }
 0x122   :  { %292 = dma.done.wait [#allocation4], 128  }
 0x123   :  { %293 = vsyncadd [#allocation4], 4294967168 }
 0x124   :  { %165 = vsyncpa [#allocation3], 1 }
 0x125   :  { %166 = vsyncpa [#allocation6], 1 }
 0x126   :  { %167 = vsyncpa [#allocation4], 1 }

</bundles_post_ra>
